<compile_context>
chip_gen: v5e
topology: v5e:2x2
jax: 0.10.0
libtpu: 0.0.40
codegen_flags: <defaults>
</compile_context>

<pallas_src>
import functools

import jax
import jax.numpy as jnp
from jax import lax
from jax.experimental import pallas as pl
from jax.experimental.pallas import tpu as pltpu


def _miou_kernel(logits_ref, labels_ref, inter_ref, card_ref,
                 inter_acc, card_acc, *, hw, tile_hw, needs_mask):
    t = pl.program_id(1)

    @pl.when(t == 0)
    def _():
        inter_acc[...] = jnp.zeros_like(inter_acc)
        card_acc[...] = jnp.zeros_like(card_acc)

    logits = logits_ref[...].astype(jnp.float32)   # (C, TILE_HW), cast in VMEM
    labels = labels_ref[...]                       # (1, TILE_HW) int32
    c = logits.shape[0]

    # softmax over the class (sublane) axis
    m = jnp.max(logits, axis=0, keepdims=True)
    e = jnp.exp(logits - m)
    denom = jnp.sum(e, axis=0, keepdims=True)
    probas = e * pl.reciprocal(denom, approx=True)

    # one-hot of labels along the class (sublane) axis
    class_ids = lax.broadcasted_iota(jnp.int32, (c, tile_hw), 0)
    one_hot = (class_ids == labels).astype(jnp.float32)

    inter_term = probas * one_hot        # (C, TILE_HW)
    card_term = probas + one_hot         # (C, TILE_HW)

    if needs_mask:
        # Mask out-of-range pixels of the ragged tail tile (OOB reads are
        # unspecified values; jnp.where keeps them out of the accumulators).
        pix = t * tile_hw + lax.broadcasted_iota(jnp.int32, (c, tile_hw), 1)
        valid = pix < hw
        inter_term = jnp.where(valid, inter_term, 0.0)
        card_term = jnp.where(valid, card_term, 0.0)

    # Pure-VPU elementwise accumulation; cross-lane reduce deferred to the end.
    inter_acc[...] += inter_term
    card_acc[...] += card_term

    @pl.when(t == pl.num_programs(1) - 1)
    def _():
        inter_ref[...] = jnp.sum(inter_acc[...], axis=-1, keepdims=True)  # (C, 1)
        card_ref[...] = jnp.sum(card_acc[...], axis=-1, keepdims=True)    # (C, 1)


def miou(y_pred, y, eps=1e-05, tile_hw=1024):
    """y_pred: (N, C, H, W) float logits; y: (N, 1, H, W) int labels.

    Returns per-class IoU, shape (C,), float32.
    """
    n, c, h, w = y_pred.shape
    hw = h * w

    # Free metadata reshapes only -- keep the data class-major, native dtype.
    logits = y_pred.reshape(n, c, hw)
    labels = y.reshape(n, 1, hw).astype(jnp.int32)

    if hw <= tile_hw:
        tile_hw = hw                      # full pixel extent in one tile
    else:
        tile_hw = max(128, (tile_hw // 128) * 128)   # lane-aligned tile
    grid_t = pl.cdiv(hw, tile_hw)
    needs_mask = (hw % tile_hw) != 0

    kernel = functools.partial(_miou_kernel, hw=hw, tile_hw=tile_hw,
                               needs_mask=needs_mask)

    # Explicit VMEM budget (double-buffered inputs + scratch), clamped so the
    # same code is safe on v7x's 64 MiB as well as v5e/v6e's 128 MiB.
    itemsize = jnp.dtype(y_pred.dtype).itemsize
    need = (2 * (tile_hw * c * itemsize + tile_hw * 4)   # double-buffered inputs
            + 2 * c * tile_hw * 4                        # accumulator scratch
            + 2 * c * 4)                                 # outputs
    vmem_limit = int(min(max(2 * need, 32 << 20), 64 << 20))

    inter, card = pl.pallas_call(
        kernel,
        out_shape=(jax.ShapeDtypeStruct((n, c, 1), jnp.float32),
                   jax.ShapeDtypeStruct((n, c, 1), jnp.float32)),
        grid_spec=pltpu.PrefetchScalarGridSpec(
            num_scalar_prefetch=0,
            grid=(n, grid_t),
            in_specs=[
                pl.BlockSpec((None, c, tile_hw), lambda i, t: (i, 0, t)),
                pl.BlockSpec((None, 1, tile_hw), lambda i, t: (i, 0, t)),
            ],
            out_specs=[
                pl.BlockSpec((None, c, 1), lambda i, t: (i, 0, 0)),
                pl.BlockSpec((None, c, 1), lambda i, t: (i, 0, 0)),
            ],
            scratch_shapes=[
                pltpu.VMEM((c, tile_hw), jnp.float32),
                pltpu.VMEM((c, tile_hw), jnp.float32),
            ],
        ),
        compiler_params=pltpu.CompilerParams(
            dimension_semantics=("parallel", "arbitrary"),
            vmem_limit_bytes=vmem_limit),
    )(logits, labels)

    # Tiny wrapper reduction over the batch axis, then the IoU ratio.
    inter = jnp.sum(inter[..., 0], axis=0)   # (C,)
    card = jnp.sum(card[..., 0], axis=0)     # (C,)
    union = card - inter
    return inter / (union + eps)


def _miou_ref(y_pred, y, eps=1e-05):
    n, c, h, w = y_pred.shape
    one_hot = jax.nn.one_hot(y.reshape(n, h, w), c, dtype=jnp.float32)  # (N,H,W,C)
    one_hot = jnp.transpose(one_hot, (0, 3, 1, 2))                      # (N,C,H,W)
    probas = jax.nn.softmax(y_pred.astype(jnp.float32), axis=1)
    dims = (0, 2, 3)
    inter = jnp.sum(probas * one_hot, axis=dims)
    card = jnp.sum(probas + one_hot, axis=dims)
    union = card - inter
    return inter / (union + eps)


if __name__ == "__main__":
    key = jax.random.PRNGKey(0)
    k1, k2, k3, k4 = jax.random.split(key, 4)

    # Primary test: the module's nominal small shape.
    N, C, H, W = 2, 4, 16, 16
    y_pred = jax.random.normal(k1, (N, C, H, W), dtype=jnp.float32)
    y = jax.random.randint(k2, (N, 1, H, W), 0, C, dtype=jnp.int32)

    iou = miou(y_pred, y)
    iou = jax.block_until_ready(iou)
    ref = _miou_ref(y_pred, y)
    assert iou.shape == (C,)
    # approx reciprocal in the softmax slightly perturbs values -> 2e-3 tol.
    assert jnp.allclose(iou, ref, atol=2e-3, rtol=2e-3), (iou, ref)

    # Secondary test: ragged pixel count exercising the cdiv grid + tail mask.
    N2, C2, H2, W2 = 2, 3, 20, 20
    y_pred2 = jax.random.normal(k3, (N2, C2, H2, W2), dtype=jnp.float32)
    y2 = jax.random.randint(k4, (N2, 1, H2, W2), 0, C2, dtype=jnp.int32)
    iou2 = jax.block_until_ready(miou(y_pred2, y2, tile_hw=128))
    ref2 = _miou_ref(y_pred2, y2)
    assert jnp.allclose(iou2, ref2, atol=2e-3, rtol=2e-3), (iou2, ref2)

    print("KERNEL_OK")
</pallas_src>

<mosaic_0001>
module attributes {stable_mosaic.version = 11 : i64} {
  func.func @_miou_kernel(%arg0: i32, %arg1: i32, %arg2: memref<1x4x256xf32, #tpu.memory_space<vmem>>, %arg3: memref<1x1x256xi32, #tpu.memory_space<vmem>>, %arg4: memref<1x4x1xf32, #tpu.memory_space<vmem>>, %arg5: memref<1x4x1xf32, #tpu.memory_space<vmem>>, %arg6: memref<4x256xf32, #tpu.memory_space<vmem>>, %arg7: memref<4x256xf32, #tpu.memory_space<vmem>>) attributes {dimension_semantics = [#tpu.dimension_semantics<parallel>, #tpu.dimension_semantics<arbitrary>], iteration_bounds = array<i64: 2, 1>, scalar_prefetch = 0 : i64, scratch_operands = 2 : i64, tpu.core_type = #tpu.core_type<tc>, window_params = [{transform_indices = @transform_0, window_bounds = array<i64: 1, 4, 256>}, {transform_indices = @transform_1, window_bounds = array<i64: 1, 1, 256>}, {transform_indices = @transform_2, window_bounds = array<i64: 1, 4, 1>}, {transform_indices = @transform_3, window_bounds = array<i64: 1, 4, 1>}]} {
    %c0_i32 = arith.constant 0 : i32
    %0 = arith.cmpi eq, %arg1, %c0_i32 : i32
    %1 = arith.extui %0 : i1 to i32
    %c0_i32_0 = arith.constant 0 : i32
    %2 = arith.cmpi ne, %1, %c0_i32_0 : i32
    scf.if %2 {
      %cst_17 = arith.constant 0.000000e+00 : f32
      %33 = vector.broadcast %cst_17 : f32 to vector<4x256xf32>
      %c0_18 = arith.constant 0 : index
      %c0_19 = arith.constant 0 : index
      %34 = vector.load %arg6[%c0_18, %c0_19] : memref<4x256xf32, #tpu.memory_space<vmem>>, vector<4x256xf32>
      tpu.vector_store %arg6[%c0_18, %c0_19], %33 {strides = array<i32>} : memref<4x256xf32, #tpu.memory_space<vmem>>, vector<4x256xf32>,
      %cst_20 = arith.constant 0.000000e+00 : f32
      %35 = vector.broadcast %cst_20 : f32 to vector<4x256xf32>
      %c0_21 = arith.constant 0 : index
      %c0_22 = arith.constant 0 : index
      %36 = vector.load %arg7[%c0_21, %c0_22] : memref<4x256xf32, #tpu.memory_space<vmem>>, vector<4x256xf32>
      tpu.vector_store %arg7[%c0_21, %c0_22], %35 {strides = array<i32>} : memref<4x256xf32, #tpu.memory_space<vmem>>, vector<4x256xf32>,
    } else {
    }
    %c0 = arith.constant 0 : index
    %c0_1 = arith.constant 0 : index
    %c0_2 = arith.constant 0 : index
    %3 = vector.load %arg2[%c0, %c0_1, %c0_2] : memref<1x4x256xf32, #tpu.memory_space<vmem>>, vector<1x4x256xf32>
    %4 = vector.shape_cast %3 : vector<1x4x256xf32> to vector<4x256xf32>
    %c0_3 = arith.constant 0 : index
    %c0_4 = arith.constant 0 : index
    %c0_5 = arith.constant 0 : index
    %5 = vector.load %arg3[%c0_3, %c0_4, %c0_5] : memref<1x1x256xi32, #tpu.memory_space<vmem>>, vector<1x1x256xi32>
    %6 = vector.shape_cast %5 : vector<1x1x256xi32> to vector<1x256xi32>
    %cst = arith.constant dense<0xFF800000> : vector<256xf32>
    %7 = vector.multi_reduction <maximumf>, %4, %cst [0] : vector<4x256xf32> to vector<256xf32>
    %8 = vector.shape_cast %7 : vector<256xf32> to vector<1x256xf32>
    %9 = vector.broadcast %8 : vector<1x256xf32> to vector<4x256xf32>
    %10 = arith.subf %4, %9 : vector<4x256xf32>
    %11 = math.exp %10 : vector<4x256xf32>
    %cst_6 = arith.constant dense<0.000000e+00> : vector<256xf32>
    %12 = vector.multi_reduction <add>, %11, %cst_6 [0] : vector<4x256xf32> to vector<256xf32>
    %13 = vector.shape_cast %12 : vector<256xf32> to vector<1x256xf32>
    %14 = tpu.reciprocal %13 {approx = true} : vector<1x256xf32> -> vector<1x256xf32>
    %15 = vector.broadcast %14 : vector<1x256xf32> to vector<4x256xf32>
    %16 = arith.mulf %11, %15 : vector<4x256xf32>
    %17 = tpu.iota {dimensions = array<i32: 0>} : vector<4x256xi32>
    %18 = vector.broadcast %6 : vector<1x256xi32> to vector<4x256xi32>
    %19 = arith.cmpi eq, %17, %18 : vector<4x256xi32>
    %20 = arith.extui %19 : vector<4x256xi1> to vector<4x256xi32>
    %21 = arith.sitofp %20 : vector<4x256xi32> to vector<4x256xf32>
    %22 = arith.mulf %16, %21 : vector<4x256xf32>
    %23 = arith.addf %16, %21 : vector<4x256xf32>
    %c0_7 = arith.constant 0 : index
    %c0_8 = arith.constant 0 : index
    %24 = vector.load %arg6[%c0_7, %c0_8] : memref<4x256xf32, #tpu.memory_space<vmem>>, vector<4x256xf32>
    %25 = arith.addf %24, %22 : vector<4x256xf32>
    %c0_9 = arith.constant 0 : index
    %c0_10 = arith.constant 0 : index
    %26 = vector.load %arg6[%c0_9, %c0_10] : memref<4x256xf32, #tpu.memory_space<vmem>>, vector<4x256xf32>
    tpu.vector_store %arg6[%c0_9, %c0_10], %25 {strides = array<i32>} : memref<4x256xf32, #tpu.memory_space<vmem>>, vector<4x256xf32>,
    %c0_11 = arith.constant 0 : index
    %c0_12 = arith.constant 0 : index
    %27 = vector.load %arg7[%c0_11, %c0_12] : memref<4x256xf32, #tpu.memory_space<vmem>>, vector<4x256xf32>
    %28 = arith.addf %27, %23 : vector<4x256xf32>
    %c0_13 = arith.constant 0 : index
    %c0_14 = arith.constant 0 : index
    %29 = vector.load %arg7[%c0_13, %c0_14] : memref<4x256xf32, #tpu.memory_space<vmem>>, vector<4x256xf32>
    tpu.vector_store %arg7[%c0_13, %c0_14], %28 {strides = array<i32>} : memref<4x256xf32, #tpu.memory_space<vmem>>, vector<4x256xf32>,
    %c0_i32_15 = arith.constant 0 : i32
    %30 = arith.cmpi eq, %arg1, %c0_i32_15 : i32
    %31 = arith.extui %30 : i1 to i32
    %c0_i32_16 = arith.constant 0 : i32
    %32 = arith.cmpi ne, %31, %c0_i32_16 : i32
    scf.if %32 {
      %c0_17 = arith.constant 0 : index
      %c0_18 = arith.constant 0 : index
      %33 = vector.load %arg6[%c0_17, %c0_18] : memref<4x256xf32, #tpu.memory_space<vmem>>, vector<4x256xf32>
      %cst_19 = arith.constant dense<0.000000e+00> : vector<4xf32>
      %34 = vector.multi_reduction <add>, %33, %cst_19 [1] : vector<4x256xf32> to vector<4xf32>
      %35 = vector.shape_cast %34 : vector<4xf32> to vector<4x1xf32>
      %c0_20 = arith.constant 0 : index
      %c0_21 = arith.constant 0 : index
      %c0_22 = arith.constant 0 : index
      %36 = vector.load %arg4[%c0_20, %c0_21, %c0_22] : memref<1x4x1xf32, #tpu.memory_space<vmem>>, vector<1x4x1xf32>
      %37 = vector.shape_cast %36 : vector<1x4x1xf32> to vector<4x1xf32>
      %38 = vector.shape_cast %35 : vector<4x1xf32> to vector<1x4x1xf32>
      tpu.vector_store %arg4[%c0_20, %c0_21, %c0_22], %38 {strides = array<i32>} : memref<1x4x1xf32, #tpu.memory_space<vmem>>, vector<1x4x1xf32>,
      %c0_23 = arith.constant 0 : index
      %c0_24 = arith.constant 0 : index
      %39 = vector.load %arg7[%c0_23, %c0_24] : memref<4x256xf32, #tpu.memory_space<vmem>>, vector<4x256xf32>
      %cst_25 = arith.constant dense<0.000000e+00> : vector<4xf32>
      %40 = vector.multi_reduction <add>, %39, %cst_25 [1] : vector<4x256xf32> to vector<4xf32>
      %41 = vector.shape_cast %40 : vector<4xf32> to vector<4x1xf32>
      %c0_26 = arith.constant 0 : index
      %c0_27 = arith.constant 0 : index
      %c0_28 = arith.constant 0 : index
      %42 = vector.load %arg5[%c0_26, %c0_27, %c0_28] : memref<1x4x1xf32, #tpu.memory_space<vmem>>, vector<1x4x1xf32>
      %43 = vector.shape_cast %42 : vector<1x4x1xf32> to vector<4x1xf32>
      %44 = vector.shape_cast %41 : vector<4x1xf32> to vector<1x4x1xf32>
      tpu.vector_store %arg5[%c0_26, %c0_27, %c0_28], %44 {strides = array<i32>} : memref<1x4x1xf32, #tpu.memory_space<vmem>>, vector<1x4x1xf32>,
    } else {
    }
    return
  }
  func.func @transform_0(%arg0: i32, %arg1: i32) -> (i32, i32, i32) {
    %c0_i32 = arith.constant 0 : i32
    %c0_i32_0 = arith.constant 0 : i32
    return %arg0, %c0_i32, %arg1 : i32, i32, i32
  }
  func.func @transform_1(%arg0: i32, %arg1: i32) -> (i32, i32, i32) {
    %c0_i32 = arith.constant 0 : i32
    %c0_i32_0 = arith.constant 0 : i32
    return %arg0, %c0_i32, %arg1 : i32, i32, i32
  }
  func.func @transform_2(%arg0: i32, %arg1: i32) -> (i32, i32, i32) {
    %c0_i32 = arith.constant 0 : i32
    %c0_i32_0 = arith.constant 0 : i32
    %c0_i32_1 = arith.constant 0 : i32
    return %arg0, %c0_i32, %c0_i32_0 : i32, i32, i32
  }
  func.func @transform_3(%arg0: i32, %arg1: i32) -> (i32, i32, i32) {
    %c0_i32 = arith.constant 0 : i32
    %c0_i32_0 = arith.constant 0 : i32
    %c0_i32_1 = arith.constant 0 : i32
    return %arg0, %c0_i32, %c0_i32_0 : i32, i32, i32
  }
}

</mosaic_0001>

<bundles_post_ra>
// kernel: tpu_custom_call.1
= control target key start
LH: loop header
LB: loop body
LE: loop exit
PB: predicated region body
PF: predicated region fallthrough
CT: control target
= control target key end

     0   :  { %9 = vsyncpa [#allocation5], 0  ;;  %s855_s0 = inlined_call_operand.hbm [shape: f32[2,4,256], index: 0, kind: input, shape index: {}]   ;;  %s856_s1 = inlined_call_operand.hbm [shape: s32[2,1,256], index: 1, kind: input, shape index: {}]   ;;  %s857_s2 = inlined_call_operand.vmem [shape: f32[2,4,1], index: 2, kind: output, shape index: {0}]   ;;  %s858_s3 = inlined_call_operand.vmem [shape: f32[2,4,1], index: 3, kind: output, shape index: {1}]  }
   0x1   :  { %11 = vsyncpa [#allocation5 + $0x1], 0 }
   0x2   :  { %12 = vsyncpa [#allocation7], 0 }
   0x3   :  { %14 = vsyncpa [#allocation7 + $0x1], 0  ;;  %s734_s12 = smov 0   ;;  %s736_s13 = smov 0  }
   0x4   :  { %s738_s14 = smov 0   ;;  %s740_s15 = smov 0  }
   0x5   :  { %s742_s16 = smov 0   ;;  %s744_s17 = smov 0  }
   0x6 LB: > { %s511_s18 = sadd.s32 4294967295, %s711_s17   ;;  %s32_s19 = sadd.s32 1, %s707_s16  ;;  %s711_s17 = sphi %s744_s17, %s20_s17   ;;  %s707_s16 = sphi %s742_s16, %s866_s16   ;;  %s703_s15 = sphi %s740_s15, %s865_s15   ;;  %s699_s14 = sphi %s738_s14, %s864_s14   ;;  %s695_s13 = sphi %s736_s13, %s863_s13   ;;  %s691_s12 = sphi %s734_s12, %s862_s12  }
   0x7   : > { %p34_p0 = scmp.ge.s32.totalorder %s32_s19, 2  ;;  %s41_s20 = sadd.s32 1, %s699_s14 }
   0x8   : > { %p48_p1 = scmp.ne.s32.totalorder %s699_s14, %s695_s13  ;;  %p49_p2 = scmp.eq.s32.totalorder %s711_s17, 0 }
   0x9   : > { %s868_s19 = smov (%p34_p0, %s32_s19), 0  ;;  %p54_p4 = scmp.ne.s32.totalorder %s695_s13, %s691_s12 }
   0xa   : > { %p770_p3 = por %p49_p2, %p48_p1  ;;  %s36_s22 = ssub.s32 %s707_s16, %s868_s19 }
   0xb   : > { %p55_p5 = scmp.eq.s32.totalorder %s511_s18, 0  ;;  %p39_p6 = scmp.eq.s32.totalorder %s36_s22, 0 }
   0xc   : > { %p541_p8 = scmp.lt.s32.totalorder %s711_s17, 2  ;;  %s158_s25 = sand.u32 1, %s699_s14  }
   0xd   : > { %p777_p7 = por %p55_p5, %p54_p4  ;;  %s529_s26 = sshll.u32 %s707_s16, 3 }
   0xe   : > { %s783_s24 = scalar_select %p39_p6, %s699_s14, %s41_s20  }
   0xf   : > { %s515_s27 = sshll.u32 %s158_s25, 3  ;;  %s169_s30 = scalar_lea.hbm %s855_s0, %s529_s26 }
  0x10   : > { %s171_s4 = sshll.u32 %s169_s30, 4  ;;  %s162_s5 = scalar_lea.vmem [#allocation4], %s515_s27  ;;  %s172_s4 = int_to_ptr.hbm [resolvable:$true] %s171_s4 }
  0x11   : > { %s173_s6 = sshll.u32 %s162_s5, 4  ;;  %p792_p9 = pnand %p541_p8, %p770_p3  ;;  %s174_s6 = int_to_ptr.vmem [resolvable:$true] %s173_s6 }
  0x12   : > { %p520_p10 = scmp.ge.s32.totalorder %s711_s17, 1  ;;  %p199_p11 = scmp.lt.s32.totalorder %s711_s17, 3 }
  0x13   : > { %s518_s8 = sshll.u32 %s158_s25, 1  ;;  %s159_s9 = scalar_lea.sflag [#allocation5], %s158_s25 }
  0x14   : > { %537 = dma.hbm_to_vmem [thread:$0]  (!%p792_p9), %s172_s4, 128, %s174_s6, %s159_s9  }
  0x15   : > { %p200_p12 = pnand %p520_p10, %p199_p11  ;;  %s519_s10 = sshll.u32 %s707_s16, 1 }
  0x16   : > { %s184_s11 = scalar_lea.vmem [#allocation6], %s518_s8  ;;  %s190_s21 = scalar_lea.hbm %s856_s1, %s519_s10 }
  0x17   : > { %s194_s12 = sshll.u32 %s184_s11, 4  ;;  %s192_s22 = sshll.u32 %s190_s21, 4  ;;  %s195_s12 = int_to_ptr.vmem [resolvable:$true] %s194_s12  ;;  %s193_s22 = int_to_ptr.hbm [resolvable:$true] %s192_s22 }
  0x18   : > { %s181_s26 = scalar_lea.sflag [#allocation7], %s158_s25  ;;  %203 = sbr.rel (%p200_p12) target bundleno = 241 (0xf1), region = 28 }
  0x19   : > { %540 = dma.hbm_to_vmem [thread:$0]  (!%p792_p9), %s193_s22, 32, %s195_s12, %s181_s26  }
  0x1a   : > { %s205_s27 = sand.u32 (!%p200_p12), 1, %s695_s13  }
  0x1b   : > { %s521_s28 = sshll.u32 (!%p200_p12), %s205_s27, 3  ;;  %s206_s29 = scalar_lea.sflag (!%p200_p12), [#allocation5], %s205_s27 }
  0x1c   : > { %s209_s30 = scalar_lea.vmem (!%p200_p12), [#allocation4], %s521_s28 }
  0x1d   : > { %682 = dma.done.wait (%p777_p7), %s206_s29, 128  }
  0x1e   : > { %684 = vsyncadd (%p777_p7), %s206_s29, 4294967168  ;;  %s522_s4 = sshll.u32 %s205_s27, 1  ;;  %s216_s5 = scalar_lea.sflag [#allocation7], %s205_s27 }
  0x1f   : > { %s811_s6 = scalar_lea.vmem [#allocation6], %s522_s4 }
  0x20   : > { %686 = dma.done.wait (%p777_p7), %s216_s5, 32  }
  0x21   : > { %688 = vsyncadd (%p777_p7), %s216_s5, 4294967264  ;;  %v267_v0 = vld [vmem:[%s209_s30] sm:$0xff]  ;;  %vm275_vm0 = vcmask 1043456   ;;  %v326_v32 = vlaneseq  ;;  %v268_v33 = vld [vmem:[%s811_s6] sm:$0x3]  ;;  %v713_v43 = vmov 0.0  }
  0x22   : > { %270 = vst [vmem:[#allocation1] ss:$2 sm:$0xff] %v267_v0  ;;  %v329_v39 = vperm.slane %v268_v33, 1  ;;  %v328_v42 = vperm.slane %v268_v33, 0  ;;  %p253_p13 = scmp.lt.s32.totalorder %s703_s15, 1  ;;  %vm364_vm3 = vcmask 3072  }
  0x23   : > { %v327_v38 = vshrl.u32 %v326_v32, 7 }
  0x24   : > { %s870_s15 = smov (!%p253_p13, %s703_s15), 1 }
  0x25   : > { %vm331_vm1 = vcmp.eq.s32.totalorder %v327_v38, %v329_v39  ;;  %vm330_vm2 = vcmp.eq.s32.totalorder %v327_v38, %v328_v42  ;;  %s523_s23 = sshll.u32 %s870_s15, 2 }
  0x26   : > { %v526_v44 = vsel %vm331_vm1, 1.0, %v713_v43  ;;  %v525_v48 = vsel %vm330_vm2, 1.0, %v713_v43  ;;  %s256_s8 = scalar_lea.vmem %s857_s2, %s523_s23  ;;  %s260_s11 = scalar_lea.vmem %s858_s3, %s523_s23 }
  0x27   : > { %v338_v46 = vrot.slane %v526_v44, 4 }
  0x29   : > { %v271_v1 = vld.sshfl [vmem:[#allocation1] sm:$0xff pattern:$0x75316420]  ;;  %v272_v2 = vld.sshfl [vmem:[#allocation1 + $0x8] sm:$0xff pattern:$0x75316420]  ;;  %v339_v51 = vsel %vm275_vm0, %v525_v48, %v338_v46 }
  0x2a   : > { %v276_v3 = vsel %vm275_vm0, %v271_v1, -inf  ;;  %v283_v4 = vsel %vm275_vm0, %v272_v2, -inf }
  0x2b   : > { %v277_v5 = vrot.slane %v276_v3, 4  ;;  %v284_v6 = vrot.slane %v283_v4, 4 }
  0x2d   : > { %v278_v7 = vmax.f32 %v276_v3, %v277_v5  ;;  %v285_v8 = vmax.f32 %v283_v4, %v284_v6 }
  0x2f   : > { %v279_v9 = vrot.slane %v278_v7, 2  ;;  %v286_v10 = vrot.slane %v285_v8, 2 }
  0x31   : > { %v280_v11 = vmax.f32 %v278_v7, %v279_v9  ;;  %v287_v12 = vmax.f32 %v285_v8, %v286_v10 }
  0x33   : > { %v281_v13 = vrot.slane %v280_v11, 1  ;;  %v288_v14 = vrot.slane %v287_v12, 1 }
  0x35   : > { %v282_v15 = vmax.f32 %v280_v11, %v281_v13  ;;  %v289_v16 = vmax.f32 %v287_v12, %v288_v14 }
  0x37   : > { %v292_v17 = vrot.slane %v289_v16, 4 }
  0x39   : > { %v293_v18 = vsel %vm275_vm0, %v282_v15, %v292_v17 }
  0x3a   : > { %v295_v19 = vsub.f32 %v267_v0, %v293_v18 }
  0x3c   : > { %v296_v20 = vmul.f32 1.442695, %v295_v19 }
  0x3e   : > { %591 = vpow2.f32 %v296_v20 }
  0x44   : > { %v592_v21 = vpop.eup %591 }
  0x45   : > { %299 = vst [vmem:[#allocation1] ss:$2 sm:$0xff] %v592_v21 }
  0x4c   : > { %v300_v22 = vld.sshfl [vmem:[#allocation1] sm:$0xff pattern:$0x75316420]  ;;  %v301_v23 = vld.sshfl [vmem:[#allocation1 + $0x8] sm:$0xff pattern:$0x75316420] }
  0x4d   : > { %v304_v24 = vsel %vm275_vm0, %v300_v22, 0.0  ;;  %v311_v25 = vsel %vm275_vm0, %v301_v23, 0.0 }
  0x4e   : > { %v305_v26 = vrot.slane %v304_v24, 4  ;;  %v312_v27 = vrot.slane %v311_v25, 4 }
  0x50   : > { %v306_v28 = vadd.f32 %v305_v26, %v304_v24  ;;  %v313_v29 = vadd.f32 %v312_v27, %v311_v25 }
  0x52   : > { %v307_v30 = vrot.slane %v306_v28, 2  ;;  %v314_v31 = vrot.slane %v313_v29, 2 }
  0x54   : > { %v308_v34 = vadd.f32 %v307_v30, %v306_v28  ;;  %v315_v35 = vadd.f32 %v314_v31, %v313_v29 }
  0x56   : > { %v309_v36 = vrot.slane %v308_v34, 1  ;;  %v316_v37 = vrot.slane %v315_v35, 1 }
  0x58   : > { %v310_v40 = vadd.f32 %v309_v36, %v308_v34  ;;  %v317_v41 = vadd.f32 %v316_v37, %v315_v35 }
  0x5a   : > { %593 = vrcp.f32 %v310_v40 }
  0x5b   : > { %595 = vrcp.f32 %v317_v41 }
  0x60   : > { %v594_v45 = vpop.eup %593 }
  0x61   : > { %v596_v47 = vpop.eup %595 }
  0x62   : > { %v322_v49 = vrot.slane %v596_v47, 4 }
  0x64   : > { %v323_v50 = vsel %vm275_vm0, %v594_v45, %v322_v49 }
  0x65   : > { %v325_v52 = vmul.f32 %v592_v21, %v323_v50 }
  0x67   : > { %v341_v53 = vmul.f32 %v339_v51, %v325_v52  ;;  %v342_v54 = vadd.f32 %v339_v51, %v325_v52 }
  0x69   : > { %354 = vst [vmem:[#allocation1] ss:$2 sm:$0xff] %v341_v53 }
  0x70   : > { %v355_v55 = vld.sshfl [vmem:[#allocation1] sm:$0xff pattern:$0x75316420]  ;;  %v356_v56 = vld.sshfl [vmem:[#allocation1 + $0x8] sm:$0xff pattern:$0x75316420] }
  0x71   : > { %v359_v57 = vsel %vm275_vm0, %v355_v55, 0.0  ;;  %v360_v58 = vsel %vm275_vm0, %v356_v56, 0.0  ;;  %368 = vst [vmem:[#allocation1] ss:$2 sm:$0xff] %v342_v54 }
  0x72   : > { %v361_v59 = vadd.f32 %v360_v58, %v359_v57 }
  0x74   : > { %362 = vadd.xlane.f32.xlu0 %v361_v59 }
  0x78   : > { %v369_v60 = vld.sshfl [vmem:[#allocation1] sm:$0xff pattern:$0x75316420]  ;;  %v370_v61 = vld.sshfl [vmem:[#allocation1 + $0x8] sm:$0xff pattern:$0x75316420] }
  0x79   : > { %v373_v62 = vsel %vm275_vm0, %v369_v60, 0.0  ;;  %v374_v63 = vsel %vm275_vm0, %v370_v61, 0.0 }
  0x7a   : > { %v375_v0 = vadd.f32 %v374_v63, %v373_v62 }
  0x7c   : > { %376 = vadd.xlane.f32.xlu0 %v375_v0 }
  0xe7   : > { %v363_v1 = vpop.xlane.xlu0 %362 }
  0xe8   : > { %365 = vst.msk [vmem:[%s256_s8] sm:$0xf] %vm364_vm3, %v363_v1 }
  0xef   : > { %v377_v2 = vpop.xlane.xlu0 %376 }
  0xf0   : > { %378 = vst.msk [vmem:[%s260_s11] sm:$0xf] %vm364_vm3, %v377_v2 }
  0xf1 PF: > { %s20_s17 = sadd.s32 1, %s711_s17   ;;  %s862_s12 = smov %s695_s13 }
  0xf2   : > { %p17_p0 = scmp.ge.s32.totalorder %s20_s17, 4   ;;  %s863_s13 = smov %s699_s14 }
  0xf3   : > { %s864_s14 = smov %s783_s24  ;;  %s865_s15 = smov %s707_s16 }
  0xf4   : > { %s866_s16 = smov %s868_s19  ;;  %19 = sbr.rel (!%p17_p0) target bundleno = 6 (0x6), region = 101 }
  0xf9   :  { %412 = vsyncpa [#allocation5], 1 }
  0xfa   :  { %414 = vsyncpa [#allocation5 + $0x1], 1 }
  0xfb   :  { %415 = vsyncpa [#allocation7], 1 }
  0xfc   :  { %417 = vsyncpa [#allocation7 + $0x1], 1 }

</bundles_post_ra>
